<compile_context>
chip_gen: v7x
topology: tpu7x:2x2x1
jax: 0.10.0
libtpu: 0.0.40
codegen_flags: <defaults>
</compile_context>

<pallas_src>
import functools

import jax
import jax.numpy as jnp
from jax.experimental import pallas as pl
from jax.experimental.pallas import tpu as pltpu

INPUT_SIZE = 128     # len(vectorizer.vectorize(...)) — synthetic stand-in
H1 = 512
H2 = 256
NUM_ACTIONS = 64     # synthetic stand-in for NUM_ACTIONS
HEAD_WIDTH = 128     # fused policy(64) + value(1) heads, zero-padded to a full lane width


def _round_up(n, m):
    return ((n + m - 1) // m) * m


def _device_kind():
    try:
        return jax.devices()[0].device_kind.lower()
    except Exception:
        return ""


# v5e: f32 elementwise (no bf16 VPU/EUP) but bf16 output slab (halve HBM out stream).
# v6e/v7x: bf16 intermediates (relieves the single vst slot / spill traffic), f32 output.
_IS_V5E = any(s in _device_kind() for s in ("v5e", "v5 lite", "v5lite"))
ACT_DTYPE = jnp.float32 if _IS_V5E else jnp.bfloat16
OUT_DTYPE = jnp.bfloat16 if _IS_V5E else jnp.float32


def _policy_value_kernel(x_ref,
                         w1_ref, b1_ref,
                         w2_ref, b2_ref,
                         wh_ref, bh_ref,
                         out_ref, *, act_dtype):
    """One batch tile of the forward pass. Weights stay VMEM-resident across the grid."""
    x = x_ref[...].astype(jnp.bfloat16)                               # (TB, IN)

    # fc1 + relu  (bf16 operands on the MXU, f32 accumulate, act_dtype elementwise)
    h1 = jnp.dot(x, w1_ref[...], preferred_element_type=jnp.float32)
    h1 = jnp.maximum(h1.astype(act_dtype) + b1_ref[...].astype(act_dtype), 0.0)

    # fc2 + relu
    h2 = jnp.dot(h1.astype(jnp.bfloat16), w2_ref[...],
                 preferred_element_type=jnp.float32)
    h2 = jnp.maximum(h2.astype(act_dtype) + b2_ref[...].astype(act_dtype), 0.0)

    # fused heads: one lane-dense (TB, 128) matmul.
    #   cols [0, NUM_ACTIONS)          -> policy logits (no activation)
    #   col  NUM_ACTIONS               -> raw value (tanh applied in the wrapper)
    #   cols (NUM_ACTIONS, HEAD_WIDTH) -> zero padding
    heads = jnp.dot(h2.astype(jnp.bfloat16), wh_ref[...],
                    preferred_element_type=jnp.float32) + bh_ref[...]
    out_ref[...] = heads.astype(out_ref.dtype)


def _choose_tb(b_pad, target):
    tb = min(target, b_pad)
    # For mid/large batches guarantee >= 2 grid steps so the "parallel" batch axis
    # can be sharded across v7x's two TensorCores.
    if b_pad >= 256:
        tb = min(tb, _round_up(pl.cdiv(b_pad, 2), 8))
    return max(tb, 8)


def policy_value_forward(x, params, *, tb=1024):
    """x: (B, INPUT_SIZE) float32 -> (policy_logits (B, NUM_ACTIONS), value (B, 1))."""
    B = x.shape[0]
    w1, b1, w2, b2, wh, bh = params

    # Pad the batch only to the f32 sublane count (8); the last grid tile may be
    # partial — Pallas masks out-of-bounds reads/writes, padded rows are dropped below.
    b_pad = _round_up(max(B, 1), 8)
    if b_pad != B:
        x = jnp.pad(x, ((0, b_pad - B), (0, 0)))
    tb = _choose_tb(b_pad, tb)
    grid = (pl.cdiv(b_pad, tb),)

    def tiled(shape):          # batch-tiled operand
        return pl.BlockSpec(shape, lambda i: (i, 0))

    def resident(shape):       # weight/bias resident across the whole grid
        return pl.BlockSpec(shape, lambda i: (0, 0))

    in_specs = [
        tiled((tb, INPUT_SIZE)),
        resident((INPUT_SIZE, H1)), resident((1, H1)),
        resident((H1, H2)),         resident((1, H2)),
        resident((H2, HEAD_WIDTH)), resident((1, HEAD_WIDTH)),
    ]
    out_specs = tiled((tb, HEAD_WIDTH))
    out_shape = jax.ShapeDtypeStruct((b_pad, HEAD_WIDTH), OUT_DTYPE)

    flops = 2 * b_pad * (INPUT_SIZE * H1 + H1 * H2 + H2 * HEAD_WIDTH)
    bytes_accessed = (
        b_pad * INPUT_SIZE * x.dtype.itemsize                    # input stream
        + b_pad * HEAD_WIDTH * jnp.dtype(OUT_DTYPE).itemsize     # output stream
        + (w1.size + w2.size + wh.size) * 2                      # bf16 weights
        + (b1.size + b2.size + bh.size) * 4                      # f32 biases
    )
    cost = pl.CostEstimate(flops=flops, transcendentals=0,
                           bytes_accessed=bytes_accessed)

    out = pl.pallas_call(
        functools.partial(_policy_value_kernel, act_dtype=ACT_DTYPE),
        out_shape=out_shape,
        grid=grid,
        in_specs=in_specs,
        out_specs=out_specs,
        compiler_params=pltpu.CompilerParams(
            dimension_semantics=("parallel",)),
        cost_estimate=cost,
    )(x, w1, b1, w2, b2, wh, bh)

    policy_logits = out[:B, :NUM_ACTIONS].astype(jnp.float32)
    value = jnp.tanh(out[:B, NUM_ACTIONS:NUM_ACTIONS + 1].astype(jnp.float32))
    return policy_logits, value


def init_params(key):
    """PyTorch-style init U(-1/sqrt(fan_in), 1/sqrt(fan_in)).
    Weights are stored transposed (in_features, out_features) in bf16; biases in f32.
    The policy/value heads are fused into one zero-padded (H2, HEAD_WIDTH) weight."""
    def linear(key, fan_in, fan_out):
        kw, kb = jax.random.split(key)
        bound = 1.0 / jnp.sqrt(jnp.float32(fan_in))
        w = jax.random.uniform(kw, (fan_in, fan_out), jnp.float32, -bound, bound)
        b = jax.random.uniform(kb, (1, fan_out), jnp.float32, -bound, bound)
        return w, b

    k1, k2, k3, k4 = jax.random.split(key, 4)
    w1, b1 = linear(k1, INPUT_SIZE, H1)
    w2, b2 = linear(k2, H1, H2)
    wp, bp = linear(k3, H2, NUM_ACTIONS)
    wv, bv = linear(k4, H2, 1)

    # Fuse heads: columns [0, 64) = policy, column 64 = value, rest zero padding.
    wh = jnp.zeros((H2, HEAD_WIDTH), jnp.float32)
    wh = wh.at[:, :NUM_ACTIONS].set(wp).at[:, NUM_ACTIONS:NUM_ACTIONS + 1].set(wv)
    bh = jnp.zeros((1, HEAD_WIDTH), jnp.float32)
    bh = bh.at[:, :NUM_ACTIONS].set(bp).at[:, NUM_ACTIONS:NUM_ACTIONS + 1].set(bv)

    return (w1.astype(jnp.bfloat16), b1,
            w2.astype(jnp.bfloat16), b2,
            wh.astype(jnp.bfloat16), bh)


def _reference_forward(x, params):
    """Pure-JAX reference using the same precision recipe as the kernel."""
    w1, b1, w2, b2, wh, bh = params
    h1 = jnp.dot(x.astype(jnp.bfloat16), w1, preferred_element_type=jnp.float32)
    h1 = jnp.maximum(h1.astype(ACT_DTYPE) + b1.astype(ACT_DTYPE), 0.0)
    h2 = jnp.dot(h1.astype(jnp.bfloat16), w2, preferred_element_type=jnp.float32)
    h2 = jnp.maximum(h2.astype(ACT_DTYPE) + b2.astype(ACT_DTYPE), 0.0)
    heads = (jnp.dot(h2.astype(jnp.bfloat16), wh, preferred_element_type=jnp.float32)
             + bh).astype(OUT_DTYPE)
    policy = heads[:, :NUM_ACTIONS].astype(jnp.float32)
    value = jnp.tanh(heads[:, NUM_ACTIONS:NUM_ACTIONS + 1].astype(jnp.float32))
    return policy, value


if __name__ == "__main__":
    key = jax.random.PRNGKey(0)
    kx, kp = jax.random.split(key)

    batch = 2
    x = jax.random.normal(kx, (batch, INPUT_SIZE), jnp.float32)
    params = init_params(kp)

    policy_logits, value = policy_value_forward(x, params)
    jax.block_until_ready((policy_logits, value))

    ref_policy, ref_value = _reference_forward(x, params)
    assert policy_logits.shape == (batch, NUM_ACTIONS)
    assert value.shape == (batch, 1)
    assert jnp.allclose(policy_logits, ref_policy, atol=1e-2, rtol=1e-2)
    assert jnp.allclose(value, ref_value, atol=1e-2, rtol=1e-2)

    print("KERNEL_OK")
</pallas_src>

<mosaic_0001>
module attributes {stable_mosaic.version = 11 : i64} {
  func.func @_policy_value_kernel(%arg0: i32, %arg1: memref<8x128xf32, #tpu.memory_space<vmem>>, %arg2: memref<128x512xbf16, #tpu.memory_space<vmem>>, %arg3: memref<1x512xf32, #tpu.memory_space<vmem>>, %arg4: memref<512x256xbf16, #tpu.memory_space<vmem>>, %arg5: memref<1x256xf32, #tpu.memory_space<vmem>>, %arg6: memref<256x128xbf16, #tpu.memory_space<vmem>>, %arg7: memref<1x128xf32, #tpu.memory_space<vmem>>, %arg8: memref<8x128xf32, #tpu.memory_space<vmem>>) attributes {dimension_semantics = [#tpu.dimension_semantics<parallel>], iteration_bounds = array<i64: 1>, scalar_prefetch = 0 : i64, scratch_operands = 0 : i64, tpu.core_type = #tpu.core_type<tc>, window_params = [{transform_indices = @transform_0, window_bounds = array<i64: 8, 128>}, {pipeline_mode = #tpu.pipeline_mode<synchronous>, transform_indices = @transform_1, window_bounds = array<i64: 128, 512>}, {pipeline_mode = #tpu.pipeline_mode<synchronous>, transform_indices = @transform_2, window_bounds = array<i64: 1, 512>}, {pipeline_mode = #tpu.pipeline_mode<synchronous>, transform_indices = @transform_3, window_bounds = array<i64: 512, 256>}, {pipeline_mode = #tpu.pipeline_mode<synchronous>, transform_indices = @transform_4, window_bounds = array<i64: 1, 256>}, {pipeline_mode = #tpu.pipeline_mode<synchronous>, transform_indices = @transform_5, window_bounds = array<i64: 256, 128>}, {pipeline_mode = #tpu.pipeline_mode<synchronous>, transform_indices = @transform_6, window_bounds = array<i64: 1, 128>}, {transform_indices = @transform_7, window_bounds = array<i64: 8, 128>}]} {
    %c0 = arith.constant 0 : index
    %c0_0 = arith.constant 0 : index
    %0 = vector.load %arg1[%c0, %c0_0] : memref<8x128xf32, #tpu.memory_space<vmem>>, vector<8x128xf32>
    %1 = arith.truncf %0 : vector<8x128xf32> to vector<8x128xbf16>
    %c0_1 = arith.constant 0 : index
    %c0_2 = arith.constant 0 : index
    %2 = vector.load %arg2[%c0_1, %c0_2] : memref<128x512xbf16, #tpu.memory_space<vmem>>, vector<128x512xbf16>
    %cst = arith.constant dense<0.000000e+00> : vector<8x512xf32>
    %3 = tpu.matmul %1, %2, %cst {dimension_numbers = #tpu.dot_dimension_numbers<[1], [0], [0], [1], [0, 0, 1, 1], [], []>} : vector<8x128xbf16>, vector<128x512xbf16>, vector<8x512xf32> -> vector<8x512xf32>
    %4 = arith.truncf %3 : vector<8x512xf32> to vector<8x512xbf16>
    %c0_3 = arith.constant 0 : index
    %c0_4 = arith.constant 0 : index
    %5 = vector.load %arg3[%c0_3, %c0_4] : memref<1x512xf32, #tpu.memory_space<vmem>>, vector<1x512xf32>
    %6 = arith.truncf %5 : vector<1x512xf32> to vector<1x512xbf16>
    %7 = vector.broadcast %6 : vector<1x512xbf16> to vector<8x512xbf16>
    %8 = arith.addf %4, %7 : vector<8x512xbf16>
    %cst_5 = arith.constant 0.000000e+00 : bf16
    %9 = vector.broadcast %cst_5 : bf16 to vector<8x512xbf16>
    %10 = arith.maximumf %8, %9 : vector<8x512xbf16>
    %c0_6 = arith.constant 0 : index
    %c0_7 = arith.constant 0 : index
    %11 = vector.load %arg4[%c0_6, %c0_7] : memref<512x256xbf16, #tpu.memory_space<vmem>>, vector<512x256xbf16>
    %cst_8 = arith.constant dense<0.000000e+00> : vector<8x256xf32>
    %12 = tpu.matmul %10, %11, %cst_8 {dimension_numbers = #tpu.dot_dimension_numbers<[1], [0], [0], [1], [0, 0, 1, 1], [], []>} : vector<8x512xbf16>, vector<512x256xbf16>, vector<8x256xf32> -> vector<8x256xf32>
    %13 = arith.truncf %12 : vector<8x256xf32> to vector<8x256xbf16>
    %c0_9 = arith.constant 0 : index
    %c0_10 = arith.constant 0 : index
    %14 = vector.load %arg5[%c0_9, %c0_10] : memref<1x256xf32, #tpu.memory_space<vmem>>, vector<1x256xf32>
    %15 = arith.truncf %14 : vector<1x256xf32> to vector<1x256xbf16>
    %16 = vector.broadcast %15 : vector<1x256xbf16> to vector<8x256xbf16>
    %17 = arith.addf %13, %16 : vector<8x256xbf16>
    %cst_11 = arith.constant 0.000000e+00 : bf16
    %18 = vector.broadcast %cst_11 : bf16 to vector<8x256xbf16>
    %19 = arith.maximumf %17, %18 : vector<8x256xbf16>
    %c0_12 = arith.constant 0 : index
    %c0_13 = arith.constant 0 : index
    %20 = vector.load %arg6[%c0_12, %c0_13] : memref<256x128xbf16, #tpu.memory_space<vmem>>, vector<256x128xbf16>
    %cst_14 = arith.constant dense<0.000000e+00> : vector<8x128xf32>
    %21 = tpu.matmul %19, %20, %cst_14 {dimension_numbers = #tpu.dot_dimension_numbers<[1], [0], [0], [1], [0, 0, 1, 1], [], []>} : vector<8x256xbf16>, vector<256x128xbf16>, vector<8x128xf32> -> vector<8x128xf32>
    %c0_15 = arith.constant 0 : index
    %c0_16 = arith.constant 0 : index
    %22 = vector.load %arg7[%c0_15, %c0_16] : memref<1x128xf32, #tpu.memory_space<vmem>>, vector<1x128xf32>
    %23 = vector.broadcast %22 : vector<1x128xf32> to vector<8x128xf32>
    %24 = arith.addf %21, %23 : vector<8x128xf32>
    %c0_17 = arith.constant 0 : index
    %c0_18 = arith.constant 0 : index
    %25 = vector.load %arg8[%c0_17, %c0_18] : memref<8x128xf32, #tpu.memory_space<vmem>>, vector<8x128xf32>
    tpu.vector_store %arg8[%c0_17, %c0_18], %24 {strides = array<i32>} : memref<8x128xf32, #tpu.memory_space<vmem>>, vector<8x128xf32>,
    return
  }
  func.func @transform_0(%arg0: i32) -> (i32, i32) {
    %c0_i32 = arith.constant 0 : i32
    %c0_i32_0 = arith.constant 0 : i32
    return %arg0, %c0_i32 : i32, i32
  }
  func.func @transform_1(%arg0: i32) -> (i32, i32) {
    %c0_i32 = arith.constant 0 : i32
    %c0_i32_0 = arith.constant 0 : i32
    %c0_i32_1 = arith.constant 0 : i32
    return %c0_i32, %c0_i32_0 : i32, i32
  }
  func.func @transform_2(%arg0: i32) -> (i32, i32) {
    %c0_i32 = arith.constant 0 : i32
    %c0_i32_0 = arith.constant 0 : i32
    %c0_i32_1 = arith.constant 0 : i32
    return %c0_i32, %c0_i32_0 : i32, i32
  }
  func.func @transform_3(%arg0: i32) -> (i32, i32) {
    %c0_i32 = arith.constant 0 : i32
    %c0_i32_0 = arith.constant 0 : i32
    %c0_i32_1 = arith.constant 0 : i32
    return %c0_i32, %c0_i32_0 : i32, i32
  }
  func.func @transform_4(%arg0: i32) -> (i32, i32) {
    %c0_i32 = arith.constant 0 : i32
    %c0_i32_0 = arith.constant 0 : i32
    %c0_i32_1 = arith.constant 0 : i32
    return %c0_i32, %c0_i32_0 : i32, i32
  }
  func.func @transform_5(%arg0: i32) -> (i32, i32) {
    %c0_i32 = arith.constant 0 : i32
    %c0_i32_0 = arith.constant 0 : i32
    %c0_i32_1 = arith.constant 0 : i32
    return %c0_i32, %c0_i32_0 : i32, i32
  }
  func.func @transform_6(%arg0: i32) -> (i32, i32) {
    %c0_i32 = arith.constant 0 : i32
    %c0_i32_0 = arith.constant 0 : i32
    %c0_i32_1 = arith.constant 0 : i32
    return %c0_i32, %c0_i32_0 : i32, i32
  }
  func.func @transform_7(%arg0: i32) -> (i32, i32) {
    %c0_i32 = arith.constant 0 : i32
    %c0_i32_0 = arith.constant 0 : i32
    return %arg0, %c0_i32 : i32, i32
  }
}

</mosaic_0001>

<bundles_post_ra>
// kernel: tpu_custom_call.1
= control target key start
LH: loop header
LB: loop body
LE: loop exit
PB: predicated region body
PF: predicated region fallthrough
CT: control target
= control target key end

     0   :  { %12 = vsyncpa [#allocation3], 0  ;;  %s1708_s0 = inlined_call_operand.hbm [shape: f32[8,128], index: 0, kind: input, shape index: {}]   ;;  %s1709_s1 = inlined_call_operand.hbm [shape: bf16[128,512], index: 1, kind: input, shape index: {}]   ;;  %s1710_s2 = inlined_call_operand.vmem [shape: f32[1,512], index: 2, kind: input, shape index: {}]   ;;  %s1711_s3 = inlined_call_operand.hbm [shape: bf16[512,256], index: 3, kind: input, shape index: {}]   ;;  %s1712_s4 = inlined_call_operand.vmem [shape: f32[1,256], index: 4, kind: input, shape index: {}]   ;;  %s1713_s5 = inlined_call_operand.hbm [shape: bf16[256,128], index: 5, kind: input, shape index: {}]   ;;  %s1714_s6 = inlined_call_operand.vmem [shape: f32[1,128], index: 6, kind: input, shape index: {}]   ;;  %s1715_s7 = inlined_call_operand.hbm [shape: f32[8,128], index: 7, kind: output, shape index: {}]  }
   0x1   :  { %13 = vsyncpa [#allocation6], 0 }
   0x2   :  { %14 = vsyncpa [#allocation9], 0 }
   0x3   :  { %15 = vsyncpa [#allocation4], 0  ;;  %s1545_s24 = smov [#allocation5]   ;;  %s1427_s28 = scalar_lea.hbm %s1709_s1, 4096 }
   0x4   :  { %s31_s25 = sshll.u32 %s1545_s24, 4  ;;  %p1428_p0 = scmp.ne.s32.totalorder %s1709_s1, %s1427_s28  ;;  %s32_s25 = int_to_ptr.vmem [resolvable:$true] %s31_s25 }
   0x5   :  { %p1431_p1 = scmp.lt.u32.totalorder %s1427_s28, %s1709_s1 }
   0x7   :  { %p1433_p2 = pnand %p1431_p1, %p1428_p0 }
   0x9   :  { %1436 = shalt.err (!%p1433_p2)
}
   0xa   :  { %s1437_s10 = scalar_lea.vmem %s32_s25, 4096  ;;  %p1442_p4 = scmp.lt.s32.totalorder %s32_s25, %s32_s25 }
   0xb   :  { %p1438_p3 = scmp.ne.s32.totalorder %s32_s25, %s1437_s10  ;;  %p1443_p5 = scmp.lt.s32.totalorder %s1437_s10, %s1437_s10 }
   0xd   :  { %p1444_p6 = por %p1443_p5, %p1442_p4 }
   0xf   :  { %p1445_p7 = pnand %p1444_p6, %p1438_p3 }
  0x11   :  { %1448 = shalt.err (!%p1445_p7)
}
  0x12   :  { %s1546_s11 = smov 256   ;;  %s1547_s12 = smov 16  }
  0x13   :  { %37 = dma.hbm_to_vmem [thread:$0]  %s1709_s1, 4096, %s32_s25, [#allocation6], %s1546_s11, %s1546_s11, %s1547_s12  }
  0x14   :  { %s1548_s15 = smov [#allocation2]   ;;  %s1549_s17 = smov [#allocation7]  }
  0x15   :  { %s22_s16 = sshll.u32 %s1548_s15, 4  ;;  %s45_s18 = sshll.u32 %s1549_s17, 4  ;;  %s23_s16 = int_to_ptr.vmem [resolvable:$true] %s22_s16  ;;  %s46_s18 = int_to_ptr.vmem [resolvable:$true] %s45_s18 }
  0x16   :  { %s1449_s21 = scalar_lea.hbm %s1708_s0, 128 }
  0x17   :  { %p1450_p8 = scmp.ne.s32.totalorder %s1708_s0, %s1449_s21  ;;  %p1453_p9 = scmp.lt.u32.totalorder %s1449_s21, %s1708_s0 }
  0x19   :  { %p1455_p10 = pnand %p1453_p9, %p1450_p8 }
  0x1b   :  { %1458 = shalt.err (!%p1455_p10)
}
  0x1c   :  { %s1459_s1 = scalar_lea.vmem %s23_s16, 128  ;;  %p1464_p12 = scmp.lt.s32.totalorder %s23_s16, %s23_s16 }
  0x1d   :  { %p1460_p11 = scmp.ne.s32.totalorder %s23_s16, %s1459_s1  ;;  %p1465_p13 = scmp.lt.s32.totalorder %s1459_s1, %s1459_s1 }
  0x1f   :  { %p1466_p0 = por %p1465_p13, %p1464_p12 }
  0x21   :  { %p1467_p1 = pnand %p1466_p0, %p1460_p11 }
  0x23   :  { %1470 = shalt.err (!%p1467_p1)
}
  0x24   :  { %25 = dma.hbm_to_vmem [thread:$0]  %s1708_s0, 128, %s23_s16, [#allocation3]  }
  0x25   :  { %s1471_s30 = scalar_lea.hbm %s1711_s3, 8192 }
  0x26   :  { %p1472_p2 = scmp.ne.s32.totalorder %s1711_s3, %s1471_s30  ;;  %p1475_p3 = scmp.lt.u32.totalorder %s1471_s30, %s1711_s3 }
  0x28   :  { %p1477_p4 = pnand %p1475_p3, %p1472_p2 }
  0x2a   :  { %1480 = shalt.err (!%p1477_p4)
}
  0x2b   :  { %s1481_s12 = scalar_lea.vmem %s46_s18, 8192  ;;  %p1486_p6 = scmp.lt.s32.totalorder %s46_s18, %s46_s18 }
  0x2c   :  { %p1482_p5 = scmp.ne.s32.totalorder %s46_s18, %s1481_s12  ;;  %p1487_p7 = scmp.lt.s32.totalorder %s1481_s12, %s1481_s12 }
  0x2e   :  { %p1488_p8 = por %p1487_p7, %p1486_p6 }
  0x30   :  { %p1489_p9 = pnand %p1488_p8, %p1482_p5 }
  0x32   :  { %1492 = shalt.err (!%p1489_p9)
}
  0x33   :  { %s1550_s0 = smov 128   ;;  %s1551_s13 = smov 8  }
  0x34   :  { %51 = dma.hbm_to_vmem [thread:$0]  %s1711_s3, 8192, %s46_s18, [#allocation6], %s1550_s0, %s1550_s0, %s1551_s13  }
  0x35   :  { %s1552_s16 = smov [#allocation8]   ;;  %s1493_s21 = scalar_lea.hbm %s1713_s5, 2048 }
  0x36   :  { %s59_s17 = sshll.u32 %s1552_s16, 4  ;;  %p1494_p10 = scmp.ne.s32.totalorder %s1713_s5, %s1493_s21  ;;  %s60_s17 = int_to_ptr.vmem [resolvable:$true] %s59_s17 }
  0x37   :  { %p1497_p11 = scmp.lt.u32.totalorder %s1493_s21, %s1713_s5 }
  0x39   :  { %p1499_p12 = pnand %p1497_p11, %p1494_p10 }
  0x3b   :  { %1502 = shalt.err (!%p1499_p12)
}
  0x3c   :  { %s1503_s1 = scalar_lea.vmem %s60_s17, 2048  ;;  %p1508_p0 = scmp.lt.s32.totalorder %s60_s17, %s60_s17 }
  0x3d   :  { %p1504_p13 = scmp.ne.s32.totalorder %s60_s17, %s1503_s1  ;;  %p1509_p1 = scmp.lt.s32.totalorder %s1503_s1, %s1503_s1 }
  0x3f   :  { %p1510_p2 = por %p1509_p1, %p1508_p0 }
  0x41   :  { %p1511_p3 = pnand %p1510_p2, %p1504_p13 }
  0x43   :  { %1514 = shalt.err (!%p1511_p3)
}
  0x44   :  { %s1553_s3 = smov 64   ;;  %s1554_s18 = smov 4  }
  0x45   :  { %65 = dma.hbm_to_vmem [thread:$0]  %s1713_s5, 2048, %s60_s17, [#allocation9], %s1553_s3, %s1553_s3, %s1554_s18  }
  0x46   :  { %1537 = dma.done.wait [#allocation3], 128  }
  0x47   :  { %1538 = vsyncadd [#allocation3], 4294967168 }
  0x48   :  { %1539 = dma.done.wait [#allocation6], 12288  }
  0x49   :  { %1540 = vsyncadd [#allocation6], 4294955008 }
  0x4a   :  { %1541 = dma.done.wait [#allocation9], 2048  }
  0x4b   :  { %1542 = vsyncadd [#allocation9], 4294965248  ;;  %v1555_v0 = vmov 0   ;;  %v1267_v1 = vld [vmem:[#allocation5 + $0x4] ss:$16 sps:$4 sm:$0xff]   ;;  %v81_v22 = vld [vmem:[#allocation2] sm:$0xff] }
  0x4c   :  { %307 = vmatprep.mubr.bf16.mxu1 %v1555_v0  ;;  %v1269_v2 = vld [vmem:[#allocation5] ss:$16 sps:$4 sm:$0xff]   ;;  %275 = vmatprep.subr.bf16.mxu1 %v1267_v1  ;;  %v1270_v3 = vld [vmem:[#allocation5 + $0x24] ss:$16 sps:$4 sm:$0xff]   ;;  %v1293_v23 = vld [vmem:[#allocation5 + $0xc] ss:$16 sps:$4 sm:$0xff]   ;;  %v1646_v25 = vpack.c.bf16 %v81_v22, %v81_v22 }
  0x4d   :  { %276 = vmatpush1.bf16.msra.mxu1 %v1269_v2  ;;  %v1272_v4 = vld [vmem:[#allocation5 + $0x20] ss:$16 sps:$4 sm:$0xff]   ;;  %v1273_v5 = vld [vmem:[#allocation5 + $0x44] ss:$16 sps:$4 sm:$0xff]   ;;  %v1291_v27 = vld [vmem:[#allocation5 + $0x8] ss:$16 sps:$4 sm:$0xff]  }
  0x4e   :  { %277 = vmatprep.subr.bf16.mxu1 %v1270_v3  ;;  %v1275_v6 = vld [vmem:[#allocation5 + $0x40] ss:$16 sps:$4 sm:$0xff]   ;;  %v1276_v7 = vld [vmem:[#allocation5 + $0x64] ss:$16 sps:$4 sm:$0xff]   ;;  %v1296_v28 = vld [vmem:[#allocation5 + $0x2c] ss:$16 sps:$4 sm:$0xff]  }
  0x4f   :  { %v1278_v8 = vld [vmem:[#allocation5 + $0x60] ss:$16 sps:$4 sm:$0xff]   ;;  %v1279_v9 = vld [vmem:[#allocation5 + $0x84] ss:$16 sps:$4 sm:$0xff]   ;;  %v1294_v31 = vld [vmem:[#allocation5 + $0x28] ss:$16 sps:$4 sm:$0xff]  }
  0x50   :  { %v1281_v10 = vld [vmem:[#allocation5 + $0x80] ss:$16 sps:$4 sm:$0xff]   ;;  %v1282_v11 = vld [vmem:[#allocation5 + $0xa4] ss:$16 sps:$4 sm:$0xff]   ;;  %v1299_v32 = vld [vmem:[#allocation5 + $0x4c] ss:$16 sps:$4 sm:$0xff]  }
  0x51   :  { %278 = vmatpush1.bf16.msra.mxu1 %v1272_v4  ;;  %v1284_v12 = vld [vmem:[#allocation5 + $0xa0] ss:$16 sps:$4 sm:$0xff]   ;;  %v1285_v13 = vld [vmem:[#allocation5 + $0xc4] ss:$16 sps:$4 sm:$0xff]   ;;  %v1297_v33 = vld [vmem:[#allocation5 + $0x48] ss:$16 sps:$4 sm:$0xff]  }
  0x52   :  { %279 = vmatprep.subr.bf16.mxu1 %v1273_v5  ;;  %v1287_v14 = vld [vmem:[#allocation5 + $0xc0] ss:$16 sps:$4 sm:$0xff]   ;;  %v1315_v15 = vld [vmem:[#allocation7 + $0x4] ss:$8 sps:$4 sm:$0xff]   ;;  %v1318_v17 = vld [vmem:[#allocation7 + $0x14] ss:$8 sps:$4 sm:$0xff]   ;;  %v363_v5 = vlaneseq }
  0x53   :  { %v1317_v16 = vld [vmem:[#allocation7] ss:$8 sps:$4 sm:$0xff]   ;;  %v1288_v18 = vld [vmem:[#allocation5 + $0xe4] ss:$16 sps:$4 sm:$0xff]   ;;  %807 = vmatprep.subr.bf16.mxu0 %v1315_v15  ;;  %v1320_v19 = vld [vmem:[#allocation7 + $0x10] ss:$8 sps:$4 sm:$0xff]  }
  0x54   :  { %808 = vmatpush1.bf16.msra.mxu0 %v1317_v16  ;;  %v1290_v20 = vld [vmem:[#allocation5 + $0xe0] ss:$16 sps:$4 sm:$0xff]   ;;  %v1321_v21 = vld [vmem:[#allocation7 + $0x24] ss:$8 sps:$4 sm:$0xff]   ;;  %v1324_v26 = vld [vmem:[#allocation7 + $0x34] ss:$8 sps:$4 sm:$0xff]  }
  0x55   :  { %280 = vmatpush1.bf16.msra.mxu1 %v1275_v6  ;;  %809 = vmatprep.subr.bf16.mxu0 %v1318_v17  ;;  %v1323_v24 = vld [vmem:[#allocation7 + $0x20] ss:$8 sps:$4 sm:$0xff]   ;;  %v1326_v29 = vld [vmem:[#allocation7 + $0x30] ss:$8 sps:$4 sm:$0xff]   ;;  %v1327_v30 = vld [vmem:[#allocation7 + $0x44] ss:$8 sps:$4 sm:$0xff]  }
  0x56   :  { %281 = vmatprep.subr.bf16.mxu1 %v1276_v7  ;;  %v1329_v34 = vld [vmem:[#allocation7 + $0x40] ss:$8 sps:$4 sm:$0xff]   ;;  %v1302_v35 = vld [vmem:[#allocation5 + $0x6c] ss:$16 sps:$4 sm:$0xff]   ;;  %v1332_v37 = vld [vmem:[#allocation7 + $0x50] ss:$8 sps:$4 sm:$0xff]  }
  0x57   :  { %v1330_v36 = vld [vmem:[#allocation7 + $0x54] ss:$8 sps:$4 sm:$0xff]   ;;  %v1333_v38 = vld [vmem:[#allocation7 + $0x64] ss:$8 sps:$4 sm:$0xff]   ;;  %v1300_v39 = vld [vmem:[#allocation5 + $0x68] ss:$16 sps:$4 sm:$0xff]  }
  0x58   :  { %810 = vmatpush1.bf16.msra.mxu0 %v1320_v19  ;;  %v1305_v40 = vld [vmem:[#allocation5 + $0x8c] ss:$16 sps:$4 sm:$0xff]   ;;  %v1335_v41 = vld [vmem:[#allocation7 + $0x60] ss:$8 sps:$4 sm:$0xff]   ;;  %v1338_v45 = vld [vmem:[#allocation7 + $0x70] ss:$8 sps:$4 sm:$0xff]  }
  0x59   :  { %282 = vmatpush1.bf16.msra.mxu1 %v1278_v8  ;;  %811 = vmatprep.subr.bf16.mxu0 %v1321_v21  ;;  %v1336_v42 = vld [vmem:[#allocation7 + $0x74] ss:$8 sps:$4 sm:$0xff]   ;;  %v1303_v43 = vld [vmem:[#allocation5 + $0x88] ss:$16 sps:$4 sm:$0xff]   ;;  %v1339_v46 = vld [vmem:[#allocation7 + $0x84] ss:$8 sps:$4 sm:$0xff]  }
  0x5a   :  { %283 = vmatprep.subr.bf16.mxu1 %v1279_v9  ;;  %v1308_v44 = vld [vmem:[#allocation5 + $0xac] ss:$16 sps:$4 sm:$0xff]   ;;  %v1306_v47 = vld [vmem:[#allocation5 + $0xa8] ss:$16 sps:$4 sm:$0xff]   ;;  %v1651_v6 = vshrl.u32 %v363_v5, 7  ;;  %v1416_v15 = vld [vmem:[#allocation8 + $0x10] sm:$0xff]  }
  0x5b   :  { %v1311_v48 = vld [vmem:[#allocation5 + $0xcc] ss:$16 sps:$4 sm:$0xff]   ;;  %v1341_v49 = vld [vmem:[#allocation7 + $0x80] ss:$8 sps:$4 sm:$0xff]   ;;  %v1344_v53 = vld [vmem:[#allocation7 + $0x90] ss:$8 sps:$4 sm:$0xff]  }
  0x5c   :  { %812 = vmatpush1.bf16.msra.mxu0 %v1323_v24  ;;  %v1342_v50 = vld [vmem:[#allocation7 + $0x94] ss:$8 sps:$4 sm:$0xff]   ;;  %v1309_v51 = vld [vmem:[#allocation5 + $0xc8] ss:$16 sps:$4 sm:$0xff]   ;;  %v1345_v54 = vld [vmem:[#allocation7 + $0xa4] ss:$8 sps:$4 sm:$0xff]  }
  0x5d   :  { %284 = vmatpush1.bf16.msra.mxu1 %v1281_v10  ;;  %813 = vmatprep.subr.bf16.mxu0 %v1324_v26  ;;  %v1314_v52 = vld [vmem:[#allocation5 + $0xec] ss:$16 sps:$4 sm:$0xff]   ;;  %v1312_v55 = vld [vmem:[#allocation5 + $0xe8] ss:$16 sps:$4 sm:$0xff]   ;;  %v373_v7 = vsub.s32 2, %v1651_v6  ;;  %v1411_v10 = vld [vmem:[#allocation8 + $0x40] sm:$0xff]  }
  0x5e   :  { %285 = vmatprep.subr.bf16.mxu1 %v1282_v11  ;;  %v1347_v56 = vld [vmem:[#allocation7 + $0xa0] ss:$8 sps:$4 sm:$0xff]   ;;  %v1348_v57 = vld [vmem:[#allocation7 + $0xb4] ss:$8 sps:$4 sm:$0xff]   ;;  %v1350_v58 = vld [vmem:[#allocation7 + $0xb0] ss:$8 sps:$4 sm:$0xff]  }
  0x5f   :  { %v1351_v59 = vld [vmem:[#allocation7 + $0xc4] ss:$8 sps:$4 sm:$0xff]   ;;  %v1353_v60 = vld [vmem:[#allocation7 + $0xc0] ss:$8 sps:$4 sm:$0xff]   ;;  %v1354_v61 = vld [vmem:[#allocation7 + $0xd4] ss:$8 sps:$4 sm:$0xff]  }
  0x60   :  { %814 = vmatpush1.bf16.msra.mxu0 %v1326_v29  ;;  %v1356_v62 = vld [vmem:[#allocation7 + $0xd0] ss:$8 sps:$4 sm:$0xff]   ;;  %v1357_v63 = vld [vmem:[#allocation7 + $0xe4] ss:$8 sps:$4 sm:$0xff]   ;;  %v1359_v1 = vld [vmem:[#allocation7 + $0xe0] ss:$8 sps:$4 sm:$0xff]  }
  0x61   :  { %286 = vmatpush1.bf16.msra.mxu1 %v1284_v12  ;;  %815 = vmatprep.subr.bf16.mxu0 %v1327_v30  ;;  %v1360_v2 = vld [vmem:[#allocation7 + $0xf4] ss:$8 sps:$4 sm:$0xff]   ;;  %v1362_v3 = vld [vmem:[#allocation7 + $0xf0] ss:$8 sps:$4 sm:$0xff]   ;;  %v1365_v4 = vld [vmem:[#allocation7 + $0x104] ss:$8 sps:$4 sm:$0xff]  }
  0x62   :  { %287 = vmatprep.subr.bf16.mxu1 %v1285_v13  ;;  %v1657_v8 = vld [vmem:[%s1710_s2] sm:$0xf]  ;;  %v1412_v11 = vld [vmem:[#allocation8] sm:$0xff]   ;;  %v1413_v12 = vld [vmem:[#allocation8 + $0x48] sm:$0xff]   ;;  %v1663_v22 = vsub.s32 0, %v1651_v6  ;;  %s1556_s8 = smov [#allocation10]  }
  0x63   :  { %v1660_v9 = vrot.slane %v1657_v8, %v373_v7  ;;  %v1414_v13 = vld [vmem:[#allocation8 + $0x8] sm:$0xff]   ;;  %v1417_v16 = vld [vmem:[#allocation8 + $0x58] sm:$0xff]   ;;  %v1420_v19 = vld [vmem:[#allocation8 + $0x20] sm:$0xff]   ;;  %s1105_s9 = sshll.u32 %s1556_s8, 4  ;;  %s1106_s9 = int_to_ptr.vmem [resolvable:$true] %s1105_s9 }
  0x64   :  { %816 = vmatpush1.bf16.msra.mxu0 %v1329_v34  ;;  %v1418_v17 = vld [vmem:[#allocation8 + $0x18] sm:$0xff]   ;;  %v1422_v21 = vld [vmem:[#allocation8 + $0x28] sm:$0xff]   ;;  %v366_v24 = vrot.slane %v1657_v8, %v1663_v22  ;;  %s1515_s10 = scalar_lea.vmem %s1106_s9, 128  ;;  %p1520_p5 = scmp.lt.s32.totalorder %s1106_s9, %s1106_s9 }
  0x65   :  { %288 = vmatpush1.bf16.msra.mxu1 %v1287_v14  ;;  %817 = vmatprep.subr.bf16.mxu0 %v1330_v36  ;;  %v1415_v14 = vld [vmem:[#allocation8 + $0x50] sm:$0xff]   ;;  %p1516_p4 = scmp.ne.s32.totalorder %s1106_s9, %s1515_s10  ;;  %p1521_p6 = scmp.lt.s32.totalorder %s1515_s10, %s1515_s10 }
  0x66   :  { %289 = vmatprep.subr.bf16.mxu1 %v1288_v18  ;;  %v1419_v18 = vld [vmem:[#allocation8 + $0x60] sm:$0xff]   ;;  %v383_v26 = vpack.c.bf16 %v366_v24, %v366_v24  ;;  %v1404_v24 = vld [vmem:[#allocation7 + $0x1d4] ss:$8 sps:$4 sm:$0xff]  }
  0x67   :  { %p1522_p7 = por %p1521_p6, %p1520_p5 }
  0x68   :  { %818 = vmatpush1.bf16.msra.mxu0 %v1332_v37 }
  0x69   :  { %290 = vmatpush1.bf16.msra.mxu1 %v1290_v20  ;;  %819 = vmatprep.subr.bf16.mxu0 %v1333_v38  ;;  %v1421_v20 = vld [vmem:[#allocation8 + $0x68] sm:$0xff]   ;;  %p1523_p8 = pnand %p1522_p7, %p1516_p4 }
  0x6a   :  { %316 = vmatprep.subr.bf16.mxu1 %v1293_v23  ;;  %v369_v23 = vsub.s32 1, %v1651_v6 }
  0x6c   :  { %308 = vmatmul.mubr.bf16.vlgmr.msra.gmra.mrb[0].mxu1 %v1646_v25  ;;  %820 = vmatpush1.bf16.msra.mxu0 %v1335_v41  ;;  %v1363_v41 = vld [vmem:[#allocation7 + $0x100] ss:$8 sps:$4 sm:$0xff]  }
  0x6d   :  { %317 = vmatpush1.bf16.msra.mxu1 %v1291_v27  ;;  %348 = vmatprep.mubr.bf16.mxu1 %v1555_v0 }
  0x6e   :  { %318 = vmatprep.subr.bf16.mxu1 %v1296_v28  ;;  %821 = vmatprep.subr.bf16.mxu0 %v1336_v42  ;;  %v388_v28 = vpack.i.b16 %v383_v26, %v383_v26  ;;  %v1407_v26 = vld [vmem:[#allocation7 + $0x1e4] ss:$8 sps:$4 sm:$0xff]  }
  0x70   :  { %822 = vmatpush1.bf16.msra.mxu0 %v1338_v45  ;;  %v393_v30 = vrot.slane %v388_v28, %v1663_v22  ;;  %v1371_v45 = vld [vmem:[#allocation7 + $0x124] ss:$8 sps:$4 sm:$0xff]   ;;  %v1410_v28 = vld [vmem:[#allocation7 + $0x1f4] ss:$8 sps:$4 sm:$0xff]  }
  0x71   :  { %319 = vmatpush1.bf16.msra.mxu1 %v1294_v31  ;;  %823 = vmatprep.subr.bf16.mxu0 %v1339_v46  ;;  %v1369_v46 = vld [vmem:[#allocation7 + $0x120] ss:$8 sps:$4 sm:$0xff]  }
  0x72   :  { %320 = vmatprep.subr.bf16.mxu1 %v1299_v32 }
  0x74   :  { %824 = vmatpush1.bf16.msra.mxu0 %v1341_v49  ;;  %v1372_v49 = vld [vmem:[#allocation7 + $0x130] ss:$8 sps:$4 sm:$0xff]  }
  0x75   :  { %321 = vmatpush1.bf16.msra.mxu1 %v1297_v33  ;;  %825 = vmatprep.subr.bf16.mxu0 %v1342_v50  ;;  %v1377_v50 = vld [vmem:[#allocation7 + $0x144] ss:$8 sps:$4 sm:$0xff]  }
  0x76   :  { %322 = vmatprep.subr.bf16.mxu1 %v1302_v35 }
  0x78   :  { %826 = vmatpush1.bf16.msra.mxu0 %v1344_v53  ;;  %v1380_v53 = vld [vmem:[#allocation7 + $0x154] ss:$8 sps:$4 sm:$0xff]  }
  0x79   :  { %323 = vmatpush1.bf16.msra.mxu1 %v1300_v39  ;;  %827 = vmatprep.subr.bf16.mxu0 %v1345_v54  ;;  %v385_v54 = vpack.c.bf16 %v1660_v9, %v1660_v9 }
  0x7a   :  { %324 = vmatprep.subr.bf16.mxu1 %v1305_v40 }
  0x7c   :  { %828 = vmatpush1.bf16.msra.mxu0 %v1347_v56  ;;  %v1378_v56 = vld [vmem:[#allocation7 + $0x150] ss:$8 sps:$4 sm:$0xff]  }
  0x7d   :  { %325 = vmatpush1.bf16.msra.mxu1 %v1303_v43  ;;  %829 = vmatprep.subr.bf16.mxu0 %v1348_v57  ;;  %v1368_v43 = vld [vmem:[#allocation7 + $0x114] ss:$8 sps:$4 sm:$0xff]   ;;  %v1383_v57 = vld [vmem:[#allocation7 + $0x164] ss:$8 sps:$4 sm:$0xff]  }
  0x7e   :  { %326 = vmatprep.subr.bf16.mxu1 %v1308_v44  ;;  %v1366_v44 = vld [vmem:[#allocation7 + $0x110] ss:$8 sps:$4 sm:$0xff]  }
  0x80   :  { %830 = vmatpush1.bf16.msra.mxu0 %v1350_v58  ;;  %v402_v58 = vpack.i.b16 %v385_v54, %v385_v54 }
  0x81   :  { %327 = vmatpush1.bf16.msra.mxu1 %v1306_v47  ;;  %831 = vmatprep.subr.bf16.mxu0 %v1351_v59  ;;  %v1374_v47 = vld [vmem:[#allocation7 + $0x134] ss:$8 sps:$4 sm:$0xff]  }
  0x82   :  { %328 = vmatprep.subr.bf16.mxu1 %v1311_v48  ;;  %v377_v48 = vsub.s32 3, %v1651_v6 }
  0x84   :  { %832 = vmatpush1.bf16.msra.mxu0 %v1353_v60  ;;  %v1381_v60 = vld [vmem:[#allocation7 + $0x160] ss:$8 sps:$4 sm:$0xff]  }
  0x85   :  { %329 = vmatpush1.bf16.msra.mxu1 %v1309_v51  ;;  %833 = vmatprep.subr.bf16.mxu0 %v1354_v61  ;;  %v378_v51 = vrot.slane %v1657_v8, %v377_v48  ;;  %v1386_v61 = vld [vmem:[#allocation7 + $0x174] ss:$8 sps:$4 sm:$0xff]  }
  0x86   :  { %330 = vmatprep.subr.bf16.mxu1 %v1314_v52  ;;  %v1375_v52 = vld [vmem:[#allocation7 + $0x140] ss:$8 sps:$4 sm:$0xff]  }
  0x88   :  { %834 = vmatpush1.bf16.msra.mxu0 %v1356_v62  ;;  %v407_v62 = vrot.slane %v402_v58, %v1663_v22 }
  0x89   :  { %331 = vmatpush1.bf16.msra.mxu1 %v1312_v55  ;;  %835 = vmatprep.subr.bf16.mxu0 %v1357_v63  ;;  %v386_v55 = vpack.c.bf16 %v378_v51, %v378_v51 }
  0x8a   :  { %1229 = vmatprep.subr.bf16.mxu1 %v1411_v10 }
  0x8b   :  { %v409_v59 = vpack.i.b16 %v386_v55, %v386_v55 }
  0x8c   :  { %349 = vmatmul.mubr.bf16.vlgmr.msra.gmra.mrb[4].mxu1 %v1646_v25  ;;  %836 = vmatpush1.bf16.msra.mxu0 %v1359_v1  ;;  %v370_v25 = vrot.slane %v1657_v8, %v369_v23  ;;  %v1389_v8 = vld [vmem:[#allocation7 + $0x184] ss:$8 sps:$4 sm:$0xff]  }
  0x8d   :  { %837 = vmatprep.subr.bf16.mxu0 %v1360_v2  ;;  %1230 = vmatpush3.bf16.msra.mxu1 %v1412_v11  ;;  %v414_v1 = vrot.slane %v409_v59, %v1663_v22 }
  0x8e   :  { %1231 = vmatprep.subr.bf16.mxu1 %v1413_v12  ;;  %v384_v27 = vpack.c.bf16 %v370_v25, %v370_v25  ;;  %v1387_v12 = vld [vmem:[#allocation7 + $0x180] ss:$8 sps:$4 sm:$0xff]   ;;  %v1402_v25 = vld [vmem:[#allocation7 + $0x1d0] ss:$8 sps:$4 sm:$0xff]  }
  0x90   :  { %838 = vmatpush1.bf16.msra.mxu0 %v1362_v3  ;;  %v395_v29 = vpack.i.b16 %v384_v27, %v384_v27  ;;  %v1405_v27 = vld [vmem:[#allocation7 + $0x1e0] ss:$8 sps:$4 sm:$0xff]  }
  0x91   :  { %848 = vmatprep.subr.bf16.mxu0 %v1365_v4  ;;  %1232 = vmatpush3.bf16.msra.mxu1 %v1414_v13  ;;  %v1384_v4 = vld [vmem:[#allocation7 + $0x170] ss:$8 sps:$4 sm:$0xff]  }
  0x92   :  { %1233 = vmatprep.subr.bf16.mxu1 %v1415_v14  ;;  %v400_v32 = vrot.slane %v395_v29, %v1663_v22  ;;  %v1392_v14 = vld [vmem:[#allocation7 + $0x194] ss:$8 sps:$4 sm:$0xff]   ;;  %v1408_v29 = vld [vmem:[#allocation7 + $0x1f0] ss:$8 sps:$4 sm:$0xff]  }
  0x95   :  { %1234 = vmatpush3.bf16.msra.mxu1 %v1416_v15  ;;  %v1390_v15 = vld [vmem:[#allocation7 + $0x190] ss:$8 sps:$4 sm:$0xff]  }
  0x96   :  { %1235 = vmatprep.subr.bf16.mxu1 %v1417_v16  ;;  %v1395_v16 = vld [vmem:[#allocation7 + $0x1a4] ss:$8 sps:$4 sm:$0xff]  }
  0x99   :  { %1236 = vmatpush3.bf16.msra.mxu1 %v1418_v17  ;;  %v1393_v17 = vld [vmem:[#allocation7 + $0x1a0] ss:$8 sps:$4 sm:$0xff]  }
  0x9a   :  { %1237 = vmatprep.subr.bf16.mxu1 %v1419_v18  ;;  %v1398_v18 = vld [vmem:[#allocation7 + $0x1b4] ss:$8 sps:$4 sm:$0xff]  }
  0x9d   :  { %1238 = vmatpush3.bf16.msra.mxu1 %v1420_v19  ;;  %v1396_v19 = vld [vmem:[#allocation7 + $0x1b0] ss:$8 sps:$4 sm:$0xff]  }
  0x9e   :  { %1239 = vmatprep.subr.bf16.mxu1 %v1421_v20  ;;  %v1401_v20 = vld [vmem:[#allocation7 + $0x1c4] ss:$8 sps:$4 sm:$0xff]  }
  0xa1   :  { %1240 = vmatpush3.bf16.msra.mxu1 %v1422_v21  ;;  %v1399_v21 = vld [vmem:[#allocation7 + $0x1c0] ss:$8 sps:$4 sm:$0xff]  }
 0x13f   :  { %v309_v31 = vpop.f32.mrb[0].mxu1 }
 0x140   :  { %v357_v33 = vpack.c.bf16 %v309_v31, %v309_v31  ;;  %v311_v34 = vpop.f32.mrb[1].mxu1  ;;  %v1423_v31 = vld [vmem:[#allocation8 + $0x70] sm:$0xff]  }
 0x141   :  { %v358_v35 = vpack.c.bf16 %v311_v34, %v311_v34  ;;  %v313_v36 = vpop.f32.mrb[2].mxu1  ;;  %1241 = vmatprep.subr.bf16.mxu1 %v1423_v31  ;;  %v1426_v34 = vld [vmem:[#allocation8 + $0x38] sm:$0xff]  }
 0x142   :  { %v415_v37 = vadd.bf16 %v393_v30, %v357_v33  ;;  %v314_v38 = vpop.f32.mrb[3].mxu1  ;;  %v1425_v33 = vld [vmem:[#allocation8 + $0x78] sm:$0xff]  }
 0x143   :  { %v416_v39 = vadd.bf16 %v400_v32, %v358_v35  ;;  %v1424_v32 = vld [vmem:[#allocation8 + $0x30] sm:$0xff]   ;;  %v891_v35 = vld [vmem:[%s1712_s4] sm:$0x3] }
 0x144   :  { %v419_v42 = vmax.bf16 %v1555_v0, %v415_v37  ;;  %1242 = vmatpush3.bf16.msra.mxu1 %v1424_v32  ;;  %v896_v36 = vrot.slane %v891_v35, %v1663_v22  ;;  %v900_v37 = vrot.slane %v891_v35, %v369_v23 }
 0x145   :  { %v420_v40 = vmax.bf16 %v1555_v0, %v416_v39  ;;  %1243 = vmatprep.subr.bf16.mxu1 %v1425_v33 }
 0x146   :  { %v903_v38 = vpack.c.bf16 %v896_v36, %v896_v36  ;;  %v904_v39 = vpack.c.bf16 %v900_v37, %v900_v37 }
 0x147   :  { %839 = vmatprep.mubr.bf16.mxu0 %v420_v40 }
 0x148   :  { %840 = vmatmul.mubr.bf16.vlgmr.msra.gmra.mrb[0].mxu0 %v419_v42  ;;  %1244 = vmatpush3.bf16.msra.mxu1 %v1426_v34  ;;  %v906_v40 = vpack.i.b16 %v903_v38, %v903_v38 }
 0x149   :  { %849 = vmatpush1.bf16.msra.mxu0 %v1363_v41  ;;  %v913_v41 = vpack.i.b16 %v904_v39, %v904_v39 }
 0x14a   :  { %850 = vmatprep.subr.bf16.mxu0 %v1368_v43  ;;  %v911_v42 = vrot.slane %v906_v40, %v1663_v22 }
 0x14d   :  { %851 = vmatpush1.bf16.msra.mxu0 %v1366_v44  ;;  %v918_v44 = vrot.slane %v913_v41, %v1663_v22 }
 0x14e   :  { %852 = vmatprep.subr.bf16.mxu0 %v1371_v45 }
 0x151   :  { %853 = vmatpush1.bf16.msra.mxu0 %v1369_v46 }
 0x152   :  { %854 = vmatprep.subr.bf16.mxu0 %v1374_v47 }
 0x155   :  { %855 = vmatpush1.bf16.msra.mxu0 %v1372_v49 }
 0x156   :  { %856 = vmatprep.subr.bf16.mxu0 %v1377_v50 }
 0x159   :  { %857 = vmatpush1.bf16.msra.mxu0 %v1375_v52 }
 0x15a   :  { %858 = vmatprep.subr.bf16.mxu0 %v1380_v53  ;;  %v1212_v53 = vld [vmem:[%s1714_s6] ss:$0 sm:$0xff] }
 0x15d   :  { %859 = vmatpush1.bf16.msra.mxu0 %v1378_v56 }
 0x15e   :  { %860 = vmatprep.subr.bf16.mxu0 %v1383_v57 }
 0x15f   :  { %v350_v63 = vpop.f32.mrb[4].mxu1 }
 0x160   :  { %v359_v2 = vpack.c.bf16 %v350_v63, %v350_v63  ;;  %v352_v3 = vpop.f32.mrb[5].mxu1 }
 0x161   :  { %861 = vmatpush1.bf16.msra.mxu0 %v1381_v60  ;;  %v360_v5 = vpack.c.bf16 %v352_v3, %v352_v3  ;;  %v354_v7 = vpop.f32.mrb[6].mxu1 }
 0x162   :  { %862 = vmatprep.subr.bf16.mxu0 %v1386_v61  ;;  %v417_v9 = vadd.bf16 %v407_v62, %v359_v2  ;;  %v355_v10 = vpop.f32.mrb[7].mxu1 }
 0x163   :  { %v418_v11 = vadd.bf16 %v414_v1, %v360_v5 }
 0x164   :  { %v421_v30 = vmax.bf16 %v1555_v0, %v417_v9 }
 0x165   :  { %863 = vmatpush1.bf16.msra.mxu0 %v1384_v4  ;;  %v422_v13 = vmax.bf16 %v1555_v0, %v418_v11 }
 0x166   :  { %864 = vmatprep.subr.bf16.mxu0 %v1389_v8 }
 0x167   :  { %880 = vmatprep.mubr.bf16.mxu0 %v422_v13 }
 0x169   :  { %865 = vmatpush1.bf16.msra.mxu0 %v1387_v12 }
 0x16a   :  { %866 = vmatprep.subr.bf16.mxu0 %v1392_v14 }
 0x16d   :  { %867 = vmatpush1.bf16.msra.mxu0 %v1390_v15 }
 0x16e   :  { %868 = vmatprep.subr.bf16.mxu0 %v1395_v16 }
 0x171   :  { %869 = vmatpush1.bf16.msra.mxu0 %v1393_v17 }
 0x172   :  { %870 = vmatprep.subr.bf16.mxu0 %v1398_v18 }
 0x175   :  { %871 = vmatpush1.bf16.msra.mxu0 %v1396_v19 }
 0x176   :  { %872 = vmatprep.subr.bf16.mxu0 %v1401_v20 }
 0x179   :  { %873 = vmatpush1.bf16.msra.mxu0 %v1399_v21 }
 0x17a   :  { %874 = vmatprep.subr.bf16.mxu0 %v1404_v24 }
 0x17d   :  { %875 = vmatpush1.bf16.msra.mxu0 %v1402_v25 }
 0x17e   :  { %876 = vmatprep.subr.bf16.mxu0 %v1407_v26 }
 0x181   :  { %877 = vmatpush1.bf16.msra.mxu0 %v1405_v27 }
 0x182   :  { %878 = vmatprep.subr.bf16.mxu0 %v1410_v28 }
 0x185   :  { %879 = vmatpush1.bf16.msra.mxu0 %v1408_v29 }
 0x188   :  { %881 = vmatmul.mubr.bf16.vlgmr.msra.gmra.mrb[0].mxu0 %v421_v30 }
 0x25b   :  { %v882_v43 = vpop.f32.mrb[0].mxu0 }
 0x25c   :  { %v889_v45 = vpack.c.bf16 %v882_v43, %v882_v43  ;;  %v884_v46 = vpop.f32.mrb[1].mxu0 }
 0x25d   :  { %v890_v47 = vpack.c.bf16 %v884_v46, %v884_v46  ;;  %v886_v48 = vpop.f32.mrb[2].mxu0 }
 0x25e   :  { %v919_v49 = vadd.bf16 %v911_v42, %v889_v45  ;;  %v887_v50 = vpop.f32.mrb[3].mxu0 }
 0x25f   :  { %v920_v51 = vadd.bf16 %v918_v44, %v890_v47 }
 0x260   :  { %v921_v6 = vmax.bf16 %v1555_v0, %v919_v49 }
 0x261   :  { %v922_v52 = vmax.bf16 %v1555_v0, %v920_v51 }
 0x263   :  { %1090 = vmatprep.mubr.bf16.mxu1 %v922_v52 }
 0x264   :  { %1091 = vmatmul.mubr.bf16.vlgmr.msra.gmra.mrb[8].mxu1 %v921_v6 }
 0x337   :  { %v1245_v23 = vpop.f32.mrb[8].mxu1 }
 0x338   :  { %v1246_v54 = vpop.f32.mrb[9].mxu1 }
 0x339   :  { %v1247_v22 = vadd.f32 %v1246_v54, %v1245_v23  ;;  %v1248_v55 = vpop.f32.mrb[10].mxu1 }
 0x33a   :  { %v1249_v56 = vpop.f32.mrb[11].mxu1 }
 0x33b   :  { %v1093_v57 = vadd.f32 %v1247_v22, %v1212_v53 }
 0x33d   :  { %1098 = vst [vmem:[#allocation10] sm:$0xff] %v1093_v57 }
 0x33e   :  { %1526 = shalt.err (!%p1523_p8)
}
 0x33f   :  { %s1527_s6 = scalar_lea.hbm %s1715_s7, 128 }
 0x340   :  { %p1528_p9 = scmp.ne.s32.totalorder %s1715_s7, %s1527_s6  ;;  %p1531_p10 = scmp.lt.u32.totalorder %s1527_s6, %s1715_s7 }
 0x342   :  { %p1533_p11 = pnand %p1531_p10, %p1528_p9 }
 0x344   :  { %1536 = shalt.err (!%p1533_p11)
}
 0x345   :  { %1108 = dma.vmem_to_hbm [thread:$0]  %s1106_s9, 128, %s1715_s7, [#allocation4]  }
 0x346   :  { %1543 = dma.done.wait [#allocation4], 128  }
 0x347   :  { %1544 = vsyncadd [#allocation4], 4294967168 }
 0x348   :  { %1112 = vsyncpa [#allocation3], 1 }
 0x349   :  { %1113 = vsyncpa [#allocation6], 1 }
 0x34a   :  { %1114 = vsyncpa [#allocation9], 1 }
 0x34b   :  { %1115 = vsyncpa [#allocation4], 1 }

</bundles_post_ra>
